<compile_context>
chip_gen: v7x
topology: tpu7x:2x2x1
jax: 0.10.0
libtpu: 0.0.40
codegen_flags: <defaults>
</compile_context>

<pallas_src>
import functools

import jax
import jax.numpy as jnp
from jax import lax
from jax.experimental import pallas as pl
from jax.experimental.pallas import tpu as pltpu

NEG_BIG = -9e15          # the -9000000000000000.0 sentinel used by RoHeGATConv
NEG_OFF = -1e30          # non-edge fill for the per-head softmax logits


# ----------------------------------------------------------------- device introspection
def _vmem_capacity_bytes():
    """Per-TensorCore VMEM capacity (conservative heuristic + optional exact query)."""
    kind = jax.devices()[0].device_kind
    cap = (64 << 20) if "7" in kind else (128 << 20)       # v7x: 64 MiB/TC, v5e/v6e: 128 MiB
    try:
        cap = min(int(pltpu.get_tpu_info().vmem_capacity_bytes), cap)
    except Exception:
        pass
    return cap


def _use_bf16_exp():
    # bf16 EUP exists on v6e / v7x; on v5e and older the cast would only add packing work.
    kind = jax.devices()[0].device_kind.lower()
    return not any(tag in kind for tag in ("v2", "v3", "v4", "v5"))


def _largest_div_tile(n, cap):
    """Largest multiple of 8 that divides n and is <= cap (falls back to n)."""
    best = None
    t = 8
    while t <= n:
        if n % t == 0 and t <= cap:
            best = t
        t += 8
    return best if best is not None else n


def _attention_tile_and_vmem(n, hd, requested_tile=None):
    cap_bytes = _vmem_capacity_bytes()
    budget = (3 * cap_bytes) // 4                          # headroom under physical VMEM
    if requested_tile is not None:
        return requested_tile, budget
    # VMEM estimate per dst-row tile:
    #   2 * tile*n*2   enc (bf16, double-buffered)
    #   2 * n*hd*2     resident F (bf16, constant-index block, default double buffer)
    #   2 * tile*hd*2  bf16 output block
    #   ~24 * tile*n   f32 temporaries (a_rows, s_h, logits, masks, p, ...)
    fixed = 4 * n * hd
    per_row = 28 * n + 4 * hd
    cap_rows = max((budget - fixed) // max(per_row, 1), 8)
    cap_rows = min(cap_rows, max(n // 2, 8), 1024)         # grid >= 2 -> both v7x cores busy
    return _largest_div_tile(n, cap_rows), budget


# ------------------------------------------------------------------- graph preprocessing
def rohe_encode_graph(trans, adj):
    """Per-graph preprocessing (hoisted out of the forward pass).

    Merges the dense TransM and the transposed adjacency into ONE bf16 stream:
        enc[i, j] = (TransM[i, j] + 1) * (+1 if adj[j, i] > 0 else -1)
    TransM is assumed non-negative (transition weights), so sign(enc) carries the edge bit
    exactly and |enc| - 1 recovers TransM (an off-edge 0 stays exactly 0 after bf16 rounding).
    """
    sign = jnp.where(jnp.transpose(adj) > 0.0, 1.0, -1.0)
    return (sign * (trans + 1.0)).astype(jnp.bfloat16)


# ------------------------------------------------------------------------------ projection
def _project_kernel(x_ref, w_ref, f_ref):
    f_ref[...] = jnp.dot(x_ref[...].astype(jnp.bfloat16),
                         w_ref[...].astype(jnp.bfloat16),
                         preferred_element_type=jnp.float32).astype(jnp.bfloat16)


def rohe_project(x, w_full, *, num_heads, out_feats, tile=None):
    """feat = fc(x); all heads packed into one lane-dense (N, H*D) bf16 matmul.

    x is streamed in f32 and cast to bf16 inside the kernel (no separate XLA cast pass)."""
    n, f_in = x.shape
    hd = num_heads * out_feats
    if tile is None:
        tile = _largest_div_tile(n, min(n, 512))           # big blocks; whole N when it fits
    assert n % tile == 0
    w_packed = jnp.transpose(w_full)                       # (F_in, H*D), tiny
    return pl.pallas_call(
        _project_kernel,
        grid=(n // tile,),
        in_specs=[pl.BlockSpec((tile, f_in), lambda i: (i, 0)),
                  pl.BlockSpec((f_in, hd), lambda i: (0, 0))],
        out_specs=pl.BlockSpec((tile, hd), lambda i: (i, 0)),
        out_shape=jax.ShapeDtypeStruct((n, hd), jnp.bfloat16),
        compiler_params=pltpu.CompilerParams(dimension_semantics=("parallel",)),
    )(x, w_packed)


# ------------------------------------------------------------------ attention/aggregation
def _rohe_attention_kernel(f_ref, enc_ref, o_ref, *, num_heads, out_feats, topk, exp_bf16):
    tile = enc_ref.shape[0]
    dh = out_feats

    i = pl.program_id(0)
    d0 = pl.multiple_of(i * tile, tile)

    f_tile = f_ref[pl.ds(d0, tile), :]                     # (tile, H*D) bf16

    # Decode the merged stream: enc[i, j] = sign(adj[j, i]) * (TransM[i, j] + 1).
    enc = enc_ref[...].astype(jnp.float32)                 # (tile, N)
    edge = enc > 0.0                                       # edge c -> (d0+r) exists
    trans_rows = jnp.abs(enc) - 1.0                        # TransM rows (exactly 0 off-edges)

    # A[d0+r, c] = TransM[d0+r, c] * <F[d0+r], F[c]> -- one K=128 bf16 MXU matmul; the full
    # F block is consumed here and not kept live across the head loop.
    a_sum = lax.dot_general(f_tile, f_ref[...], (((1,), (1,)), ((), ())),
                            preferred_element_type=jnp.float32)      # (tile, N)
    a_rows = trans_rows * a_sum

    # per-row T-th largest (torch.topk semantics incl. multiplicities) via level descent;
    # exact float comparisons against the kernel's own f32 product.
    kth = jnp.full((tile, 1), -jnp.inf, jnp.float32)
    done = jnp.zeros((tile, 1), jnp.bool_)
    level = jnp.max(a_rows, axis=-1, keepdims=True)
    cnt = jnp.zeros((tile, 1), jnp.float32)
    for _ in range(topk):
        eq = jnp.sum((a_rows == level).astype(jnp.float32), axis=-1, keepdims=True)
        newly = jnp.logical_and(jnp.logical_not(done), cnt + eq >= float(topk))
        kth = jnp.where(newly, level, kth)
        done = jnp.logical_or(done, newly)
        cnt = cnt + eq
        level = jnp.max(jnp.where(a_rows < level, a_rows, -jnp.inf),
                        axis=-1, keepdims=True)
    thr = jnp.maximum(kth, 0.0)

    # edge (c -> d0+r) is dropped iff A_masked[d0+r, c] < -100, i.e. A[d0+r, c] < thr[d0+r]
    # (thr >= 0 > -100); A_masked is never materialized.
    remove = a_rows < thr
    keep = jnp.logical_and(edge, jnp.logical_not(remove))  # head-invariant
    fill = jnp.where(edge, NEG_BIG, NEG_OFF)               # dropped-edge / non-edge logits

    # Static 8-way head loop; per-head temporaries die before the next head.  The 8 (tile, D)
    # results are concatenated and stored ONCE as a full-width lane-dense (tile, 128) block.
    parts = []
    for h in range(num_heads):
        f_h = f_ref[:, h * dh:(h + 1) * dh]                # (N, D) bf16, sliced from the ref
        f_h_t = f_tile[:, h * dh:(h + 1) * dh]             # (tile, D) bf16
        s_h = lax.dot_general(f_h_t, f_h, (((1,), (1,)), ((), ())),
                              preferred_element_type=jnp.float32)    # (tile, N)
        logits = jnp.where(keep, s_h, fill)
        m = jnp.maximum(jnp.max(logits, axis=-1, keepdims=True), NEG_BIG)
        z = logits - m
        if exp_bf16:
            p = jnp.exp(z.astype(jnp.bfloat16))            # bf16 EUP (v6e / v7x)
            denom = jnp.sum(p.astype(jnp.float32), axis=-1, keepdims=True)
        else:
            p_f32 = jnp.exp(z)                             # f32 EUP (v5e and older)
            denom = jnp.sum(p_f32, axis=-1, keepdims=True)
            p = p_f32.astype(jnp.bfloat16)
        # kept edges: exp(s-m); dropped edges -> 0 (or uniform if a row lost all edges,
        # matching the torch all-removed behavior); non-edges -> 0.
        inv = pl.reciprocal(jnp.where(denom > 0.0, denom, 1.0), approx=True)
        o_h = jnp.dot(p, f_h, preferred_element_type=jnp.float32)    # (tile, D)
        parts.append(o_h * inv)
    o_ref[...] = jnp.concatenate(parts, axis=-1).astype(o_ref.dtype)


def rohe_attention(feat_flat, enc, *, num_heads, out_feats, topk, tile=None,
                   out_dtype=jnp.bfloat16):
    n, hd = feat_flat.shape
    tile, vmem_budget = _attention_tile_and_vmem(n, hd, tile)
    assert n % tile == 0
    assert tile == n or tile % 8 == 0
    kernel = functools.partial(_rohe_attention_kernel, num_heads=num_heads,
                               out_feats=out_feats, topk=topk, exp_bf16=_use_bf16_exp())
    out = pl.pallas_call(
        kernel,
        grid=(n // tile,),
        # TODO(synk): pipeline_mode=pl.Buffered(1) on the resident F block would drop its
        # second VMEM buffer; left at the default for wider jax-version compatibility.
        in_specs=[pl.BlockSpec((n, hd), lambda i: (0, 0)),     # F: DMA'd once, stays resident
                  pl.BlockSpec((tile, n), lambda i: (i, 0))],  # merged bf16 TransM/adj^T rows
        out_specs=pl.BlockSpec((tile, hd), lambda i: (i, 0)),  # lane-dense (N, H*D)
        out_shape=jax.ShapeDtypeStruct((n, hd), out_dtype),
        compiler_params=pltpu.CompilerParams(
            dimension_semantics=("parallel",),      # dst tiles independent (megacore-shardable)
            vmem_limit_bytes=int(vmem_budget)),     # per-generation budget (v7x: 64 MiB/TC)
    )(feat_flat, enc)
    return out.reshape(n, num_heads, out_feats)     # reshape only, no transpose


def rohe_gat_forward(x, w_full, enc, *, num_heads, out_feats, topk, tile=None,
                     out_dtype=jnp.bfloat16):
    """Full forward: projection + masked edge-softmax aggregation.

    `enc` is the per-graph preprocessed stream from rohe_encode_graph(TransM_dense, adj)."""
    feat_flat = rohe_project(x, w_full, num_heads=num_heads, out_feats=out_feats)
    return rohe_attention(feat_flat, enc, num_heads=num_heads, out_feats=out_feats,
                          topk=topk, tile=tile, out_dtype=out_dtype)


# ---------------------------------------------------------------------------- reference
def reference_attention(feat_flat, trans_dec, adj, *, num_heads, out_feats, topk):
    """Pure-JAX dense reference of the post-projection torch forward (f32 math)."""
    n = feat_flat.shape[0]
    feat = feat_flat.astype(jnp.float32).reshape(n, num_heads, out_feats)
    s = jnp.einsum('ihd,jhd->hij', feat, feat)                  # (H, src, dst)
    a_mat = trans_dec * s.sum(axis=0)
    kth = jax.lax.top_k(a_mat, topk)[0][..., -1:]
    thr = jnp.maximum(kth, 0.0)
    a_masked = jnp.where(a_mat < thr, NEG_BIG, a_mat)
    remove = jnp.transpose(a_masked) < -100.0                   # indexed (src, dst)
    e = jnp.where(remove[None], NEG_BIG, s)
    mask = (adj > 0.0)[None]
    e_edges = jnp.where(mask, e, -jnp.inf)
    m = jnp.max(e_edges, axis=1, keepdims=True)
    p = jnp.where(mask, jnp.exp(e - m), 0.0)
    denom = jnp.sum(p, axis=1, keepdims=True)
    a = p / jnp.where(denom > 0.0, denom, 1.0)
    return jnp.einsum('hij,ihd->jhd', a, feat)                  # (N, H, D)


if __name__ == "__main__":
    # num_heads = 8 is hardcoded in the torch forward (repeat(1, 8) / view(N_e, 8, 1)).
    N, F_IN, D, H, T = 128, 32, 16, 8, 4
    key = jax.random.PRNGKey(0)
    k_x, k_w, k_adj, k_trans = jax.random.split(key, 4)

    x = jax.random.normal(k_x, (N, F_IN), dtype=jnp.float32)

    # fc = nn.Linear(F_IN, H*D, bias=False), xavier_normal_ with gain=calculate_gain('relu')
    gain = 2.0 ** 0.5
    std = gain * (2.0 / (F_IN + H * D)) ** 0.5
    w_full = jax.random.normal(k_w, (H * D, F_IN), dtype=jnp.float32) * std   # torch fc.weight
    # TODO(synk): attn_l / attn_r / leaky_relu exist in __init__ but are never used by this
    # forward path; omitted.

    # random directed graph with self-loops; adj[src, dst] = 1 means edge src -> dst
    adj = (jax.random.uniform(k_adj, (N, N)) < 0.15).astype(jnp.float32)
    adj = jnp.maximum(adj, jnp.eye(N, dtype=jnp.float32))
    # settings['TransM'] as a dense matrix (per-edge transition weights >= 0, 0 off-edges)
    trans = adj * jax.random.uniform(k_trans, (N, N), minval=0.1, maxval=1.0)

    enc = rohe_encode_graph(trans, adj)        # per-graph preprocessing, hoisted out of forward

    out = rohe_gat_forward(x, w_full, enc, num_heads=H, out_feats=D, topk=T)
    out = jax.block_until_ready(out)

    # --- validation ---
    # 1) projection kernel vs plain-JAX bf16 matmul
    feat_flat = rohe_project(x, w_full, num_heads=H, out_feats=D)
    feat_ref = jnp.dot(x.astype(jnp.bfloat16), w_full.T.astype(jnp.bfloat16),
                       preferred_element_type=jnp.float32).astype(jnp.bfloat16)
    assert bool(jnp.allclose(feat_flat.astype(jnp.float32), feat_ref.astype(jnp.float32),
                             rtol=1e-2, atol=1e-2))
    # 2) attention/aggregation kernel vs pure-JAX f32 reference on the same bf16 features and
    #    the same bf16-decoded TransM (so the discrete top-k / edge-drop decisions match).
    trans_dec = jnp.abs(enc.astype(jnp.float32)) - 1.0
    ref = reference_attention(feat_flat, trans_dec, adj, num_heads=H, out_feats=D, topk=T)
    out_f32 = out.astype(jnp.float32)
    assert out.shape == (N, H, D)
    assert bool(jnp.all(jnp.isfinite(out_f32)))
    # bf16 features / bf16 softmax weights / approx reciprocal / bf16 output (plus bf16 exp on
    # v6e+) vs the f32 reference -> percent-level tolerance.
    tol = 5e-2 if _use_bf16_exp() else 2.5e-2
    assert bool(jnp.allclose(out_f32, ref, rtol=tol, atol=tol)), \
        ("max abs err", float(jnp.max(jnp.abs(out_f32 - ref))))
    print("KERNEL_OK")
</pallas_src>

<mosaic_0001>
module attributes {stable_mosaic.version = 11 : i64} {
  func.func @_project_kernel(%arg0: i32, %arg1: memref<128x32xf32, #tpu.memory_space<vmem>>, %arg2: memref<32x128xf32, #tpu.memory_space<vmem>>, %arg3: memref<128x128xbf16, #tpu.memory_space<vmem>>) attributes {dimension_semantics = [#tpu.dimension_semantics<parallel>], iteration_bounds = array<i64: 1>, scalar_prefetch = 0 : i64, scratch_operands = 0 : i64, tpu.core_type = #tpu.core_type<tc>, window_params = [{transform_indices = @transform_0, window_bounds = array<i64: 128, 32>}, {pipeline_mode = #tpu.pipeline_mode<synchronous>, transform_indices = @transform_1, window_bounds = array<i64: 32, 128>}, {transform_indices = @transform_2, window_bounds = array<i64: 128, 128>}]} {
    %c0 = arith.constant 0 : index
    %c0_0 = arith.constant 0 : index
    %0 = vector.load %arg1[%c0, %c0_0] : memref<128x32xf32, #tpu.memory_space<vmem>>, vector<128x32xf32>
    %1 = arith.truncf %0 : vector<128x32xf32> to vector<128x32xbf16>
    %c0_1 = arith.constant 0 : index
    %c0_2 = arith.constant 0 : index
    %2 = vector.load %arg2[%c0_1, %c0_2] : memref<32x128xf32, #tpu.memory_space<vmem>>, vector<32x128xf32>
    %3 = arith.truncf %2 : vector<32x128xf32> to vector<32x128xbf16>
    %cst = arith.constant dense<0.000000e+00> : vector<128x128xf32>
    %4 = tpu.matmul %1, %3, %cst {dimension_numbers = #tpu.dot_dimension_numbers<[1], [0], [0], [1], [0, 0, 1, 1], [], []>} : vector<128x32xbf16>, vector<32x128xbf16>, vector<128x128xf32> -> vector<128x128xf32>
    %5 = arith.truncf %4 : vector<128x128xf32> to vector<128x128xbf16>
    %c0_3 = arith.constant 0 : index
    %c0_4 = arith.constant 0 : index
    %6 = vector.load %arg3[%c0_3, %c0_4] : memref<128x128xbf16, #tpu.memory_space<vmem>>, vector<128x128xbf16>
    tpu.vector_store %arg3[%c0_3, %c0_4], %5 {strides = array<i32>} : memref<128x128xbf16, #tpu.memory_space<vmem>>, vector<128x128xbf16>,
    return
  }
  func.func @transform_0(%arg0: i32) -> (i32, i32) {
    %c0_i32 = arith.constant 0 : i32
    %c0_i32_0 = arith.constant 0 : i32
    return %arg0, %c0_i32 : i32, i32
  }
  func.func @transform_1(%arg0: i32) -> (i32, i32) {
    %c0_i32 = arith.constant 0 : i32
    %c0_i32_0 = arith.constant 0 : i32
    %c0_i32_1 = arith.constant 0 : i32
    return %c0_i32, %c0_i32_0 : i32, i32
  }
  func.func @transform_2(%arg0: i32) -> (i32, i32) {
    %c0_i32 = arith.constant 0 : i32
    %c0_i32_0 = arith.constant 0 : i32
    return %arg0, %c0_i32 : i32, i32
  }
}

</mosaic_0001>

<bundles_post_ra>
// kernel: tpu_custom_call.1
= control target key start
LH: loop header
LB: loop body
LE: loop exit
PB: predicated region body
PF: predicated region fallthrough
CT: control target
= control target key end

     0   :  { %vm43_vm0 = vcmask 261120   ;;  %s507_s0 = inlined_call_operand.vmem [shape: f32[128,32], index: 0, kind: input, shape index: {}]   ;;  %s508_s1 = inlined_call_operand.vmem [shape: f32[32,128], index: 1, kind: input, shape index: {}]   ;;  %s509_s2 = inlined_call_operand.hbm [shape: bf16[128,128], index: 2, kind: output, shape index: {}]  }
   0x1   :  { %v37_v0 = vld [vmem:[%s508_s1] sm:$0xff]  ;;  %v38_v1 = vld [vmem:[%s508_s1 + $0x8] sm:$0xff]  ;;  %v39_v2 = vld [vmem:[%s508_s1 + $0x10] sm:$0xff] }
   0x2   :  { %v41_v3 = vpack.c.bf16 %v38_v1, %v37_v0  ;;  %v40_v4 = vld [vmem:[%s508_s1 + $0x18] sm:$0xff]  ;;  %v13_v5 = vld [vmem:[%s507_s0] sm:$0xff]  ;;  %v14_v6 = vld [vmem:[%s507_s0 + $0x8] sm:$0xff] }
   0x3   :  { %v42_v7 = vpack.c.bf16 %v40_v4, %v39_v2  ;;  %v29_v8 = vpack.c.bf16 %v14_v6, %v13_v5  ;;  %v21_v9 = vld [vmem:[%s507_s0 + $0x40] sm:$0xff]  ;;  %v22_v10 = vld [vmem:[%s507_s0 + $0x48] sm:$0xff]  ;;  %v15_v12 = vld [vmem:[%s507_s0 + $0x10] sm:$0xff] }
   0x4   :  { %358 = vmatprep.subr.bf16.mxu0 %v41_v3  ;;  %378 = vmatprep.subr.bf16.mxu1 %v41_v3  ;;  %v33_v11 = vpack.c.bf16 %v22_v10, %v21_v9  ;;  %v16_v13 = vld [vmem:[%s507_s0 + $0x18] sm:$0xff]  ;;  %v23_v14 = vld [vmem:[%s507_s0 + $0x50] sm:$0xff]  ;;  %v17_v16 = vld [vmem:[%s507_s0 + $0x20] sm:$0xff] }
   0x5   :  { %359 = vmatpush3.bf16.msra.mxu0 %v41_v3  ;;  %380 = vmatpush3.bf16.msra.mxu1 %v41_v3  ;;  %v24_v15 = vld [vmem:[%s507_s0 + $0x58] sm:$0xff]  ;;  %v18_v17 = vld [vmem:[%s507_s0 + $0x28] sm:$0xff]  ;;  %v25_v18 = vld [vmem:[%s507_s0 + $0x60] sm:$0xff] }
   0x6   :  { %360 = vmatprep.subr.bf16.mxu0 %v42_v7  ;;  %379 = vmatprep.subr.bf16.mxu1 %v42_v7  ;;  %v26_v19 = vld [vmem:[%s507_s0 + $0x68] sm:$0xff] }
   0x7   :  { %362 = vmatprep.mubr.msk.bf16.mxu0 %vm43_vm0, %v29_v8  ;;  %370 = vmatprep.mubr.msk.bf16.mxu1 %vm43_vm0, %v33_v11 }
   0x8   :  { %7 = vsyncpa [#allocation3], 0  ;;  %v30_v20 = vpack.c.bf16 %v16_v13, %v15_v12  ;;  %v34_v21 = vpack.c.bf16 %v24_v15, %v23_v14  ;;  %v31_v22 = vpack.c.bf16 %v18_v17, %v17_v16  ;;  %v35_v23 = vpack.c.bf16 %v26_v19, %v25_v18  ;;  %v19_v24 = vld [vmem:[%s507_s0 + $0x30] sm:$0xff]  ;;  %v20_v25 = vld [vmem:[%s507_s0 + $0x38] sm:$0xff] }
   0x9   :  { %361 = vmatpush3.bf16.msra.mxu0 %v42_v7  ;;  %381 = vmatpush3.bf16.msra.mxu1 %v42_v7  ;;  %v27_v26 = vld [vmem:[%s507_s0 + $0x70] sm:$0xff]  ;;  %v28_v27 = vld [vmem:[%s507_s0 + $0x78] sm:$0xff]  ;;  %v32_v28 = vpack.c.bf16 %v20_v25, %v19_v24  ;;  %s409_s0 = smov [#allocation2]  }
   0xa   :  { %v36_v29 = vpack.c.bf16 %v28_v27, %v27_v26  ;;  %s250_s20 = sshll.u32 %s409_s0, 4  ;;  %s251_s20 = int_to_ptr.vmem [resolvable:$true] %s250_s20 }
   0xb   :  { %s385_s21 = scalar_lea.vmem %s251_s20, 1024  ;;  %p390_p1 = scmp.lt.s32.totalorder %s251_s20, %s251_s20 }
   0xc   :  { %363 = vmatmul.mubr.msk.bf16.vlgmr.msra.gmra.mrb[0].mxu0 %vm43_vm0, %v30_v20  ;;  %371 = vmatmul.mubr.msk.bf16.vlgmr.msra.gmra.mrb[0].mxu1 %vm43_vm0, %v34_v21  ;;  %p386_p0 = scmp.ne.s32.totalorder %s251_s20, %s385_s21  ;;  %p391_p2 = scmp.lt.s32.totalorder %s385_s21, %s385_s21 }
   0xd   :  { %366 = vmatprep.mubr.msk.bf16.mxu0 %vm43_vm0, %v31_v22  ;;  %374 = vmatprep.mubr.msk.bf16.mxu1 %vm43_vm0, %v35_v23 }
   0xe   :  { %p392_p3 = por %p391_p2, %p390_p1 }
  0x10   :  { %p393_p4 = pnand %p392_p3, %p386_p0 }
  0x14   :  { %367 = vmatmul.mubr.msk.bf16.gmra.mrb[4].mxu0 %vm43_vm0, %v32_v28  ;;  %375 = vmatmul.mubr.msk.bf16.gmra.mrb[4].mxu1 %vm43_vm0, %v36_v29 }
  0xdf   :  { %v364_v30 = vpop.f32.mrb[0].mxu0  ;;  %v372_v31 = vpop.f32.mrb[0].mxu1 }
  0xe0   :  { %v102_v32 = vpop.f32.mrb[1].mxu0  ;;  %v134_v33 = vpop.f32.mrb[1].mxu1 }
  0xe1   :  { %v365_v34 = vpop.f32.mrb[2].mxu0  ;;  %v373_v35 = vpop.f32.mrb[2].mxu1 }
  0xe2   :  { %v309_v36 = vpack.c.bf16 %v365_v34, %v364_v30  ;;  %v329_v37 = vpack.c.bf16 %v373_v35, %v372_v31  ;;  %v105_v38 = vpop.f32.mrb[3].mxu0  ;;  %v137_v39 = vpop.f32.mrb[3].mxu1 }
  0xe3   :  { %v304_v40 = vpack.c.bf16 %v105_v38, %v102_v32  ;;  %v324_v41 = vpack.c.bf16 %v137_v39, %v134_v33 }
  0xe4   :  { %341 = vst [vmem:[#allocation2 + $0x8] sm:$0xff] %v309_v36   ;;  %345 = vst [vmem:[#allocation2 + $0x28] sm:$0xff] %v329_v37  }
  0xe5   :  { %305 = vst [vmem:[#allocation2] sm:$0xff] %v304_v40   ;;  %344 = vst [vmem:[#allocation2 + $0x20] sm:$0xff] %v324_v41  }
  0xe7   :  { %v368_v42 = vpop.f32.mrb[4].mxu0  ;;  %v376_v43 = vpop.f32.mrb[4].mxu1 }
  0xe8   :  { %v118_v44 = vpop.f32.mrb[5].mxu0  ;;  %v150_v45 = vpop.f32.mrb[5].mxu1 }
  0xe9   :  { %v369_v46 = vpop.f32.mrb[6].mxu0  ;;  %v377_v47 = vpop.f32.mrb[6].mxu1 }
  0xea   :  { %v319_v48 = vpack.c.bf16 %v369_v46, %v368_v42  ;;  %v339_v49 = vpack.c.bf16 %v377_v47, %v376_v43  ;;  %v121_v50 = vpop.f32.mrb[7].mxu0  ;;  %v153_v51 = vpop.f32.mrb[7].mxu1 }
  0xeb   :  { %v314_v52 = vpack.c.bf16 %v121_v50, %v118_v44  ;;  %v334_v53 = vpack.c.bf16 %v153_v51, %v150_v45 }
  0xec   :  { %343 = vst [vmem:[#allocation2 + $0x18] sm:$0xff] %v319_v48   ;;  %347 = vst [vmem:[#allocation2 + $0x38] sm:$0xff] %v339_v49  }
  0xed   :  { %342 = vst [vmem:[#allocation2 + $0x10] sm:$0xff] %v314_v52   ;;  %346 = vst [vmem:[#allocation2 + $0x30] sm:$0xff] %v334_v53  }
  0xee   :  { %396 = shalt.err (!%p393_p4)
}
  0xef   :  { %s397_s24 = scalar_lea.hbm %s509_s2, 1024 }
  0xf0   :  { %p398_p5 = scmp.ne.s32.totalorder %s509_s2, %s397_s24  ;;  %p401_p6 = scmp.lt.u32.totalorder %s397_s24, %s509_s2 }
  0xf2   :  { %p403_p7 = pnand %p401_p6, %p398_p5 }
  0xf4   :  { %406 = shalt.err (!%p403_p7)
}
  0xf5   :  { %s410_s28 = smov 64   ;;  %s411_s29 = smov 4  }
  0xf6   :  { %256 = dma.vmem_to_hbm [thread:$0]  %s251_s20, 1024, %s509_s2, [#allocation3], %s410_s28, %s410_s28, %s411_s29  }
  0xf7   :  { %407 = dma.done.wait [#allocation3], 1024  }
  0xf8   :  { %408 = vsyncadd [#allocation3], 4294966272 }
  0xf9   :  { %260 = vsyncpa [#allocation3], 1 }

</bundles_post_ra>
